<compile_context>
chip_gen: v6e
topology: v6e:2x2x1
jax: 0.10.0
libtpu: 0.0.40
codegen_flags: <defaults>
</compile_context>

<pallas_src>
import jax
import jax.numpy as jnp
from jax.experimental import pallas as pl
from jax.experimental.pallas import tpu as pltpu

# ----- config ---------------------------------------------------------------
IN_CHANNEL = 1
FILTER_NUM_LIST = [32, 64][::-1]          # -> [64, 32]
LATENT_DIM = 10
H_ENC, W_ENC = 2, 2
C_DEC_IN = FILTER_NUM_LIST[0]             # 64
C_DEC_OUT = FILTER_NUM_LIST[1]            # 32
NPIX = H_ENC * W_ENC                      # 4 encoder pixels
FLATTENED = C_DEC_IN * NPIX               # 256
H_OUT, W_OUT = 2 * H_ENC, 2 * W_ENC       # 4, 4
HW_OUT = H_OUT * W_OUT                    # 16
DECONV_WIDTH = NPIX * 4 * C_DEC_OUT       # 512 (4 input pixels x (2x2 subpixels x 32 ch))
OUT_WIDTH = IN_CHANNEL * HW_OUT           # 16 valid NCHW-ordered output lanes
OUT_PAD = 128                             # lane-dense padded output width (cols 16..127 are zero)
BN_EPS = 1e-5


def _round_up(x, m):
    return (x + m - 1) // m * m


def _choose_tiling(B):
    """Static (Python) row-tile selection: returns (tm, b_pad)."""
    if B <= 128:
        tm = _round_up(B, 8)
        return tm, tm
    best = None
    for tm in (2048, 1024, 512, 256, 128):
        b_pad = _round_up(B, tm)
        steps = b_pad // tm
        # least padding waste first, then prefer >=2 grid steps (v7x megacore),
        # then prefer bigger tiles (step-overhead amortization on v5e/v6e).
        score = (b_pad - B, 0 if steps >= 2 else 1, -tm)
        if best is None or score < best[1]:
            best = ((tm, b_pad), score)
    return best[0]


# ----- fused Pallas kernel ---------------------------------------------------
def fused_decoder_kernel(z_ref, w12_ref, b12_ref, w3_ref, b3_ref, o_ref):
    # 1) Composed (Linear -> ConvTranspose2d -> folded BN):  y = z @ W12 + b12
    #    z is bf16 (cast in wrapper); accumulate in f32, bias-add in f32.
    y = jnp.dot(z_ref[...], w12_ref[...], preferred_element_type=jnp.float32) + b12_ref[...]
    # 2) ReLU on the bf16 copy (commutes with the monotone cast; halves VALU work
    #    on the (tm, 512) intermediate on bf16-capable VPUs).
    y = jnp.maximum(y.astype(jnp.bfloat16), 0.0)
    # 3) Conv2d(32 -> 1, k=1) as a (512, 128) matmul; columns 0..15 hold the NCHW
    #    output, columns 16..127 are zero padding so the store is lane-dense.
    o = jnp.dot(y, w3_ref[...], preferred_element_type=jnp.float32) + b3_ref[...]
    o_ref[...] = o.astype(o_ref.dtype)


# ----- deterministic parameter init (shapes follow the PyTorch module) ------
def init_params(key):
    ks = jax.random.split(key, 6)
    # nn.Linear(latent_dim, flattened): stored already transposed as (L, F)
    w_lin = jax.random.normal(ks[0], (LATENT_DIM, FLATTENED), jnp.float32) / jnp.sqrt(LATENT_DIM)
    b_lin = jax.random.normal(ks[1], (1, FLATTENED), jnp.float32) * 0.01
    # ConvTranspose2d(64, 32, k=2, s=2): torch weight layout (Cin, Cout, 2, 2)
    w_dec = jax.random.normal(ks[2], (C_DEC_IN, C_DEC_OUT, 2, 2), jnp.float32) * jnp.sqrt(2.0 / (C_DEC_IN * 4))
    b_dec = jax.random.normal(ks[3], (C_DEC_OUT,), jnp.float32) * 0.01
    # BatchNorm2d(32), default init, eval-mode running stats
    gamma = jnp.ones((C_DEC_OUT,), jnp.float32)
    beta = jnp.zeros((C_DEC_OUT,), jnp.float32)
    run_mean = jnp.zeros((C_DEC_OUT,), jnp.float32)
    run_var = jnp.ones((C_DEC_OUT,), jnp.float32)
    # Conv2d(32, 1, k=1) with kaiming_normal fan_in: std = sqrt(2/32)
    w_out = jax.random.normal(ks[4], (IN_CHANNEL, C_DEC_OUT, 1, 1), jnp.float32) * jnp.sqrt(2.0 / C_DEC_OUT)
    b_out = jax.random.normal(ks[5], (IN_CHANNEL,), jnp.float32) * 0.01
    return dict(w_lin=w_lin, b_lin=b_lin, w_dec=w_dec, b_dec=b_dec,
                gamma=gamma, beta=beta, run_mean=run_mean, run_var=run_var,
                w_out=w_out, b_out=b_out)


# ----- one-time weight prep: fold BN, compose Linear@Deconv, pad 1x1 conv ----
def prepare_params(params):
    # (a) Linear: permute columns from NCHW-flat index (c*NPIX + p) to pixel-major (p*C + c)
    w1 = params["w_lin"].reshape(LATENT_DIM, C_DEC_IN, NPIX)
    w1 = jnp.transpose(w1, (0, 2, 1)).reshape(LATENT_DIM, FLATTENED)
    b1 = params["b_lin"].reshape(C_DEC_IN, NPIX).T.reshape(FLATTENED)

    # (b) ConvTranspose2d(k=2,s=2): per-pixel (Cin -> 4*Cout) matrix with BN folded:
    #     scale*(xW + b) + shift == x(W*scale) + (b*scale + shift)
    scale = params["gamma"] / jnp.sqrt(params["run_var"] + BN_EPS)
    shift = params["beta"] - params["run_mean"] * scale
    w_px = jnp.transpose(params["w_dec"], (0, 2, 3, 1)).reshape(C_DEC_IN, 4 * C_DEC_OUT)
    w_px = w_px * jnp.tile(scale, 4)[None, :]
    b_px = jnp.tile(params["b_dec"] * scale + shift, 4)
    w2 = jnp.kron(jnp.eye(NPIX, dtype=jnp.float32), w_px)        # (256, 512) block-diagonal
    b2 = jnp.tile(b_px, NPIX)                                    # (512,)

    # (c) Compose: there is no nonlinearity between Linear and deconv, so fold them
    #     into one (10, 512) weight in f32 (then bf16) and a single (512,) bias.
    w12 = w1 @ w2                                                # (10, 512)
    b12 = (b1 @ w2 + b2)[None, :]                                # (1, 512)

    # (d) Conv2d(Cout -> in_channel, k=1): scatter each (input pixel p, subpixel fg)
    #     channel block onto its NCHW output column (2i+f, 2j+g), in a lane-dense
    #     (512, 128) weight (columns >= OUT_WIDTH stay zero).
    w3 = jnp.zeros((DECONV_WIDTH, OUT_PAD), jnp.float32)
    for i in range(H_ENC):
        for j in range(W_ENC):
            for f in range(2):
                for g in range(2):
                    p, fg = i * W_ENC + j, f * 2 + g
                    r0 = (p * 4 + fg) * C_DEC_OUT
                    col_sp = (2 * i + f) * W_OUT + (2 * j + g)
                    for oc in range(IN_CHANNEL):
                        w3 = w3.at[r0:r0 + C_DEC_OUT, oc * HW_OUT + col_sp].set(
                            params["w_out"][oc].reshape(C_DEC_OUT))
    b3 = jnp.zeros((1, OUT_PAD), jnp.float32)
    b3 = b3.at[0, :OUT_WIDTH].set(jnp.repeat(params["b_out"], HW_OUT))

    return dict(w12=w12.astype(jnp.bfloat16), b12=b12.astype(jnp.float32),
                w3=w3.astype(jnp.bfloat16), b3=b3.astype(jnp.float32))


# ----- forward pass (single fused pallas_call, row-gridded) -------------------
@jax.jit
def decoder_forward(prepared, z):
    B = z.shape[0]
    tm, b_pad = _choose_tiling(B)

    zp = z.astype(jnp.bfloat16)                                  # bf16 in the wrapper
    if b_pad != B:
        zp = jnp.pad(zp, ((0, b_pad - B), (0, 0)))

    matmul_macs = LATENT_DIM * DECONV_WIDTH + DECONV_WIDTH * OUT_PAD
    weight_bytes = (LATENT_DIM * DECONV_WIDTH * 2 + DECONV_WIDTH * 4
                    + DECONV_WIDTH * OUT_PAD * 2 + OUT_PAD * 4)
    cost = pl.CostEstimate(
        flops=2 * b_pad * matmul_macs,
        transcendentals=0,
        bytes_accessed=b_pad * LATENT_DIM * 2 + b_pad * OUT_PAD * 4 + weight_bytes)

    out = pl.pallas_call(
        fused_decoder_kernel,
        out_shape=jax.ShapeDtypeStruct((b_pad, OUT_PAD), jnp.float32),
        grid_spec=pltpu.PrefetchScalarGridSpec(
            num_scalar_prefetch=0,
            grid=(b_pad // tm,),
            in_specs=[
                pl.BlockSpec((tm, LATENT_DIM), lambda i: (i, 0)),            # z rows (bf16)
                pl.BlockSpec((LATENT_DIM, DECONV_WIDTH), lambda i: (0, 0)),  # W12 (composed)
                pl.BlockSpec((1, DECONV_WIDTH), lambda i: (0, 0)),           # b12
                pl.BlockSpec((DECONV_WIDTH, OUT_PAD), lambda i: (0, 0)),     # W3 (lane-padded)
                pl.BlockSpec((1, OUT_PAD), lambda i: (0, 0)),                # b3
            ],
            out_specs=pl.BlockSpec((tm, OUT_PAD), lambda i: (i, 0)),
        ),
        compiler_params=pltpu.CompilerParams(dimension_semantics=("parallel",)),
        cost_estimate=cost,
    )(zp, prepared["w12"], prepared["b12"], prepared["w3"], prepared["b3"])

    # Drop batch padding and the zero lane padding, reshape to NCHW (B, 1, 4, 4).
    return out[:B, :OUT_WIDTH].reshape(B, IN_CHANNEL, H_OUT, W_OUT)


# ----- plain-JAX reference (same math, f32, no Pallas) ------------------------
def reference_forward(params, z):
    h = z @ params["w_lin"] + params["b_lin"][0]
    x = h.reshape(-1, C_DEC_IN, H_ENC, W_ENC)
    t = jnp.einsum("bcij,cofg->boifjg", x, params["w_dec"])
    t = t.reshape(x.shape[0], C_DEC_OUT, H_OUT, W_OUT) + params["b_dec"][None, :, None, None]
    scale = params["gamma"] / jnp.sqrt(params["run_var"] + BN_EPS)
    shift = params["beta"] - params["run_mean"] * scale
    t = jnp.maximum(t * scale[None, :, None, None] + shift[None, :, None, None], 0.0)
    w = params["w_out"].reshape(IN_CHANNEL, C_DEC_OUT)
    return jnp.einsum("bchw,oc->bohw", t, w) + params["b_out"][None, :, None, None]


if __name__ == "__main__":
    key = jax.random.PRNGKey(0)
    pkey, zkey = jax.random.split(key)
    params = init_params(pkey)
    prepared = prepare_params(params)       # one-time weight prep (outside forward)

    B = 2
    z = jax.random.normal(zkey, (B, LATENT_DIM), jnp.float32)

    out = jax.block_until_ready(decoder_forward(prepared, z))
    ref = jax.block_until_ready(reference_forward(params, z))

    assert out.shape == (B, IN_CHANNEL, H_OUT, W_OUT), out.shape
    # bf16 weights / bf16 activation into the second matmul -> relaxed tolerance vs. f32 reference
    max_err = float(jnp.max(jnp.abs(out - ref)))
    assert jnp.allclose(out, ref, atol=5e-2, rtol=5e-2), max_err
    print("KERNEL_OK")
</pallas_src>

<mosaic_0001>
module attributes {stable_mosaic.version = 11 : i64} {
  func.func @fused_decoder_kernel(%arg0: i32, %arg1: memref<8x10xbf16, #tpu.memory_space<vmem>>, %arg2: memref<10x512xbf16, #tpu.memory_space<vmem>>, %arg3: memref<1x512xf32, #tpu.memory_space<vmem>>, %arg4: memref<512x128xbf16, #tpu.memory_space<vmem>>, %arg5: memref<1x128xf32, #tpu.memory_space<vmem>>, %arg6: memref<8x128xf32, #tpu.memory_space<vmem>>) attributes {dimension_semantics = [#tpu.dimension_semantics<parallel>], iteration_bounds = array<i64: 1>, scalar_prefetch = 0 : i64, scratch_operands = 0 : i64, tpu.core_type = #tpu.core_type<tc>, window_params = [{transform_indices = @transform_0, window_bounds = array<i64: 8, 10>}, {pipeline_mode = #tpu.pipeline_mode<synchronous>, transform_indices = @transform_1, window_bounds = array<i64: 10, 512>}, {pipeline_mode = #tpu.pipeline_mode<synchronous>, transform_indices = @transform_2, window_bounds = array<i64: 1, 512>}, {pipeline_mode = #tpu.pipeline_mode<synchronous>, transform_indices = @transform_3, window_bounds = array<i64: 512, 128>}, {pipeline_mode = #tpu.pipeline_mode<synchronous>, transform_indices = @transform_4, window_bounds = array<i64: 1, 128>}, {transform_indices = @transform_5, window_bounds = array<i64: 8, 128>}]} {
    %c0 = arith.constant 0 : index
    %c0_0 = arith.constant 0 : index
    %0 = vector.load %arg1[%c0, %c0_0] : memref<8x10xbf16, #tpu.memory_space<vmem>>, vector<8x10xbf16>
    %c0_1 = arith.constant 0 : index
    %c0_2 = arith.constant 0 : index
    %1 = vector.load %arg2[%c0_1, %c0_2] : memref<10x512xbf16, #tpu.memory_space<vmem>>, vector<10x512xbf16>
    %cst = arith.constant dense<0.000000e+00> : vector<8x512xf32>
    %2 = tpu.matmul %0, %1, %cst {dimension_numbers = #tpu.dot_dimension_numbers<[1], [0], [0], [1], [0, 0, 1, 1], [], []>} : vector<8x10xbf16>, vector<10x512xbf16>, vector<8x512xf32> -> vector<8x512xf32>
    %c0_3 = arith.constant 0 : index
    %c0_4 = arith.constant 0 : index
    %3 = vector.load %arg3[%c0_3, %c0_4] : memref<1x512xf32, #tpu.memory_space<vmem>>, vector<1x512xf32>
    %4 = vector.broadcast %3 : vector<1x512xf32> to vector<8x512xf32>
    %5 = arith.addf %2, %4 : vector<8x512xf32>
    %6 = arith.truncf %5 : vector<8x512xf32> to vector<8x512xbf16>
    %cst_5 = arith.constant 0.000000e+00 : bf16
    %7 = vector.broadcast %cst_5 : bf16 to vector<8x512xbf16>
    %8 = arith.maximumf %6, %7 : vector<8x512xbf16>
    %c0_6 = arith.constant 0 : index
    %c0_7 = arith.constant 0 : index
    %9 = vector.load %arg4[%c0_6, %c0_7] : memref<512x128xbf16, #tpu.memory_space<vmem>>, vector<512x128xbf16>
    %cst_8 = arith.constant dense<0.000000e+00> : vector<8x128xf32>
    %10 = tpu.matmul %8, %9, %cst_8 {dimension_numbers = #tpu.dot_dimension_numbers<[1], [0], [0], [1], [0, 0, 1, 1], [], []>} : vector<8x512xbf16>, vector<512x128xbf16>, vector<8x128xf32> -> vector<8x128xf32>
    %c0_9 = arith.constant 0 : index
    %c0_10 = arith.constant 0 : index
    %11 = vector.load %arg5[%c0_9, %c0_10] : memref<1x128xf32, #tpu.memory_space<vmem>>, vector<1x128xf32>
    %12 = vector.broadcast %11 : vector<1x128xf32> to vector<8x128xf32>
    %13 = arith.addf %10, %12 : vector<8x128xf32>
    %c0_11 = arith.constant 0 : index
    %c0_12 = arith.constant 0 : index
    %14 = vector.load %arg6[%c0_11, %c0_12] : memref<8x128xf32, #tpu.memory_space<vmem>>, vector<8x128xf32>
    tpu.vector_store %arg6[%c0_11, %c0_12], %13 {strides = array<i32>} : memref<8x128xf32, #tpu.memory_space<vmem>>, vector<8x128xf32>,
    return
  }
  func.func @transform_0(%arg0: i32) -> (i32, i32) {
    %c0_i32 = arith.constant 0 : i32
    %c0_i32_0 = arith.constant 0 : i32
    return %arg0, %c0_i32 : i32, i32
  }
  func.func @transform_1(%arg0: i32) -> (i32, i32) {
    %c0_i32 = arith.constant 0 : i32
    %c0_i32_0 = arith.constant 0 : i32
    %c0_i32_1 = arith.constant 0 : i32
    return %c0_i32, %c0_i32_0 : i32, i32
  }
  func.func @transform_2(%arg0: i32) -> (i32, i32) {
    %c0_i32 = arith.constant 0 : i32
    %c0_i32_0 = arith.constant 0 : i32
    %c0_i32_1 = arith.constant 0 : i32
    return %c0_i32, %c0_i32_0 : i32, i32
  }
  func.func @transform_3(%arg0: i32) -> (i32, i32) {
    %c0_i32 = arith.constant 0 : i32
    %c0_i32_0 = arith.constant 0 : i32
    %c0_i32_1 = arith.constant 0 : i32
    return %c0_i32, %c0_i32_0 : i32, i32
  }
  func.func @transform_4(%arg0: i32) -> (i32, i32) {
    %c0_i32 = arith.constant 0 : i32
    %c0_i32_0 = arith.constant 0 : i32
    %c0_i32_1 = arith.constant 0 : i32
    return %c0_i32, %c0_i32_0 : i32, i32
  }
  func.func @transform_5(%arg0: i32) -> (i32, i32) {
    %c0_i32 = arith.constant 0 : i32
    %c0_i32_0 = arith.constant 0 : i32
    return %arg0, %c0_i32 : i32, i32
  }
}

</mosaic_0001>

<bundles_post_ra>
// kernel: decoder_forward.1
= control target key start
LH: loop header
LB: loop body
LE: loop exit
PB: predicated region body
PF: predicated region fallthrough
CT: control target
= control target key end

     0   :  { %10 = vsyncpa [#allocation3], 0  ;;  %s786_s0 = inlined_call_operand.vmem [shape: bf16[8,10], index: 0, kind: input, shape index: {}]   ;;  %s787_s1 = inlined_call_operand.hbm [shape: bf16[10,512], index: 1, kind: input, shape index: {}]   ;;  %s788_s2 = inlined_call_operand.vmem [shape: f32[1,512], index: 2, kind: input, shape index: {}]   ;;  %s789_s3 = inlined_call_operand.hbm [shape: bf16[512,128], index: 3, kind: input, shape index: {}]   ;;  %s790_s4 = inlined_call_operand.vmem [shape: f32[1,128], index: 4, kind: input, shape index: {}]   ;;  %s791_s5 = inlined_call_operand.vmem [shape: f32[8,128], index: 5, kind: output, shape index: {}]  }
   0x1   :  { %11 = vsyncpa [#allocation5], 0  ;;  %s723_s18 = smov [#allocation2]  }
   0x2   :  { %s19_s19 = sshll.u32 %s723_s18, 4  ;;  %s20_s19 = int_to_ptr.vmem [resolvable:$true] %s19_s19 }
   0x3   :  { %s687_s20 = scalar_lea.vmem %s20_s19, 512  ;;  %p692_p1 = scmp.lt.s32.totalorder %s20_s19, %s20_s19 }
   0x4   :  { %p688_p0 = scmp.ne.s32.totalorder %s20_s19, %s687_s20  ;;  %p693_p2 = scmp.lt.s32.totalorder %s687_s20, %s687_s20 }
   0x6   :  { %p694_p3 = por %p693_p2, %p692_p1 }
   0x8   :  { %p695_p4 = pnand %p694_p3, %p688_p0 }
   0xa   :  { %698 = shalt.err (!%p695_p4)
}
   0xb   :  { %s724_s21 = smov 256   ;;  %s725_s22 = smov 16  }
   0xc   :  { %25 = dma.hbm_to_vmem [thread:$0]  %s787_s1, 512, %s20_s19, [#allocation3], %s724_s21, %s724_s21, %s725_s22  }
   0xd   :  { %s726_s25 = smov [#allocation4]  }
   0xe   :  { %s33_s26 = sshll.u32 %s726_s25, 4  ;;  %s34_s26 = int_to_ptr.vmem [resolvable:$true] %s33_s26 }
   0xf   :  { %s707_s27 = scalar_lea.vmem %s34_s26, 4096  ;;  %p712_p6 = scmp.lt.s32.totalorder %s34_s26, %s34_s26 }
  0x10   :  { %p708_p5 = scmp.ne.s32.totalorder %s34_s26, %s707_s27  ;;  %p713_p7 = scmp.lt.s32.totalorder %s707_s27, %s707_s27 }
  0x12   :  { %p714_p8 = por %p713_p7, %p712_p6 }
  0x14   :  { %p715_p9 = pnand %p714_p8, %p708_p5 }
  0x16   :  { %718 = shalt.err (!%p715_p9)
}
  0x17   :  { %s727_s28 = smov 64   ;;  %s728_s29 = smov 4  }
  0x18   :  { %39 = dma.hbm_to_vmem [thread:$0]  %s789_s3, 4096, %s34_s26, [#allocation5], %s727_s28, %s727_s28, %s728_s29  }
  0x19   :  { %719 = dma.done.wait [#allocation3], 512  }
  0x1a   :  { %720 = vsyncadd [#allocation3], 4294966784 }
  0x1b   :  { %721 = dma.done.wait [#allocation5], 4096  }
  0x1c   :  { %722 = vsyncadd [#allocation5], 4294963200  ;;  %v729_v0 = vmov 0   ;;  %vm96_vm0 = vcmask 1044480   ;;  %vm92_vm1 = vcmask 80896   ;;  %v647_v8 = vld [vmem:[#allocation4 + $0x78] sm:$0xff]   ;;  %v56_v40 = vlaneseq }
  0x1d   :  { %141 = vmatprep.mubr.bf16.mxu0 %v729_v0  ;;  %182 = vmatprep.mubr.bf16.mxu1 %v729_v0  ;;  %v641_v1 = vld [vmem:[#allocation2 + $0x4] ss:$16 sps:$4 sm:$0x1f]   ;;  %v643_v2 = vld [vmem:[#allocation2 + $0xc] ss:$16 sps:$4 sm:$0x1f]  }
  0x1e   :  { %553 = vmatprep.subr.msk.bf16.mxu0 %vm96_vm0, %v641_v1  ;;  %v645_v3 = vld [vmem:[#allocation2] ss:$16 sps:$4 sm:$0x1f]   ;;  %v646_v4 = vld [vmem:[#allocation2 + $0x8] ss:$16 sps:$4 sm:$0x1f]   ;;  %555 = vmatprep.subr.msk.bf16.mxu1 %vm96_vm0, %v643_v2 }
  0x1f   :  { %v49_v5 = vld [vmem:[%s786_s0] sm:$0xf]  ;;  %v98_v6 = vsel %vm96_vm0, %v645_v3, 0  ;;  %v104_v7 = vsel %vm96_vm0, %v646_v4, 0  ;;  %v648_v9 = vld [vmem:[#allocation4 + $0xf8] sm:$0xff]   ;;  %v651_v12 = vld [vmem:[#allocation4 + $0x70] sm:$0xff]  }
  0x20   :  { %124 = vmatpush1.bf16.msra.mxu0 %v98_v6  ;;  %165 = vmatpush1.bf16.msra.mxu1 %v104_v7  ;;  %v649_v10 = vld [vmem:[#allocation4 + $0x38] sm:$0xff]   ;;  %v652_v13 = vld [vmem:[#allocation4 + $0xf0] sm:$0xff]   ;;  %v655_v16 = vld [vmem:[#allocation4 + $0x68] sm:$0xff]   ;;  %v57_v41 = vshrl.u32 %v56_v40, 7 }
  0x21   :  { %590 = vmatprep.subr.bf16.mxu0 %v647_v8  ;;  %612 = vmatprep.subr.bf16.mxu1 %v648_v9  ;;  %v650_v11 = vld [vmem:[#allocation4 + $0xb8] sm:$0xff]   ;;  %v653_v14 = vld [vmem:[#allocation4 + $0x30] sm:$0xff]   ;;  %v656_v17 = vld [vmem:[#allocation4 + $0xe8] sm:$0xff]  }
  0x22   :  { %v654_v15 = vld [vmem:[#allocation4 + $0xb0] sm:$0xff]   ;;  %v657_v18 = vld [vmem:[#allocation4 + $0x28] sm:$0xff]   ;;  %v659_v20 = vld [vmem:[#allocation4 + $0x60] sm:$0xff]   ;;  %v58_v42 = vsub.s32 0, %v57_v41  ;;  %v66_v43 = vsub.s32 2, %v57_v41  ;;  %v62_v45 = vsub.s32 1, %v57_v41 }
  0x23   :  { %554 = vmatmul.mubr.msk.bf16.vlgmr.msra.gmra.mxu0 %vm92_vm1, %v49_v5  ;;  %556 = vmatmul.mubr.msk.bf16.vlgmr.msra.gmra.mxu1 %vm92_vm1, %v49_v5  ;;  %v658_v19 = vld [vmem:[#allocation4 + $0xa8] sm:$0xff]   ;;  %v660_v21 = vld [vmem:[#allocation4 + $0xe0] sm:$0xff]   ;;  %v663_v24 = vld [vmem:[#allocation4 + $0x58] sm:$0xff]   ;;  %v70_v46 = vsub.s32 3, %v57_v41 }
  0x24   :  { %591 = vmatpush3.bf16.msra.mxu0 %v649_v10  ;;  %613 = vmatpush3.bf16.msra.mxu1 %v650_v11  ;;  %v661_v22 = vld [vmem:[#allocation4 + $0x20] sm:$0xff]   ;;  %v664_v25 = vld [vmem:[#allocation4 + $0xd8] sm:$0xff]   ;;  %v667_v28 = vld [vmem:[#allocation4 + $0x50] sm:$0xff]  }
  0x25   :  { %592 = vmatprep.subr.bf16.mxu0 %v651_v12  ;;  %614 = vmatprep.subr.bf16.mxu1 %v652_v13  ;;  %v662_v23 = vld [vmem:[#allocation4 + $0xa0] sm:$0xff]   ;;  %v665_v26 = vld [vmem:[#allocation4 + $0x18] sm:$0xff]   ;;  %v668_v29 = vld [vmem:[#allocation4 + $0xd0] sm:$0xff]  }
  0x26   :  { %v666_v27 = vld [vmem:[#allocation4 + $0x98] sm:$0xff]   ;;  %v669_v30 = vld [vmem:[#allocation4 + $0x10] sm:$0xff]   ;;  %v671_v32 = vld [vmem:[#allocation4 + $0x48] sm:$0xff]  }
  0x27   :  { %v670_v31 = vld [vmem:[#allocation4 + $0x90] sm:$0xff]   ;;  %v672_v33 = vld [vmem:[#allocation4 + $0xc8] sm:$0xff]   ;;  %v675_v36 = vld [vmem:[#allocation4 + $0x40] sm:$0xff]  }
  0x28   :  { %593 = vmatpush3.bf16.msra.mxu0 %v653_v14  ;;  %615 = vmatpush3.bf16.msra.mxu1 %v654_v15  ;;  %v673_v34 = vld [vmem:[#allocation4 + $0x8] sm:$0xff]   ;;  %v676_v37 = vld [vmem:[#allocation4 + $0xc0] sm:$0xff]  }
  0x29   :  { %594 = vmatprep.subr.bf16.mxu0 %v655_v16  ;;  %616 = vmatprep.subr.bf16.mxu1 %v656_v17  ;;  %v674_v35 = vld [vmem:[#allocation4 + $0x88] sm:$0xff]   ;;  %v677_v38 = vld [vmem:[#allocation4] sm:$0xff]  }
  0x2a   :  { %v678_v39 = vld [vmem:[#allocation4 + $0x80] sm:$0xff]  }
  0x2b   :  { %v54_v44 = vld [vmem:[%s788_s2] sm:$0xf] }
  0x2c   :  { %595 = vmatpush3.bf16.msra.mxu0 %v657_v18  ;;  %617 = vmatpush3.bf16.msra.mxu1 %v658_v19  ;;  %v59_v47 = vrot.slane %v54_v44, %v58_v42  ;;  %v67_v48 = vrot.slane %v54_v44, %v66_v43  ;;  %v63_v49 = vrot.slane %v54_v44, %v62_v45  ;;  %v557_v10 = vld [vmem:[%s790_s4] ss:$0 sm:$0xff] }
  0x2d   :  { %596 = vmatprep.subr.bf16.mxu0 %v659_v20  ;;  %618 = vmatprep.subr.bf16.mxu1 %v660_v21  ;;  %v71_v50 = vrot.slane %v54_v44, %v70_v46 }
  0x30   :  { %597 = vmatpush3.bf16.msra.mxu0 %v661_v22  ;;  %619 = vmatpush3.bf16.msra.mxu1 %v662_v23 }
  0x31   :  { %598 = vmatprep.subr.bf16.mxu0 %v663_v24  ;;  %620 = vmatprep.subr.bf16.mxu1 %v664_v25 }
  0x34   :  { %599 = vmatpush3.bf16.msra.mxu0 %v665_v26  ;;  %621 = vmatpush3.bf16.msra.mxu1 %v666_v27 }
  0x35   :  { %600 = vmatprep.subr.bf16.mxu0 %v667_v28  ;;  %622 = vmatprep.subr.bf16.mxu1 %v668_v29 }
  0x38   :  { %601 = vmatpush3.bf16.msra.mxu0 %v669_v30  ;;  %623 = vmatpush3.bf16.msra.mxu1 %v670_v31 }
  0x39   :  { %602 = vmatprep.subr.bf16.mxu0 %v671_v32  ;;  %624 = vmatprep.subr.bf16.mxu1 %v672_v33 }
  0x3c   :  { %603 = vmatpush3.bf16.msra.mxu0 %v673_v34  ;;  %625 = vmatpush3.bf16.msra.mxu1 %v674_v35 }
  0x3d   :  { %604 = vmatprep.subr.bf16.mxu0 %v675_v36  ;;  %626 = vmatprep.subr.bf16.mxu1 %v676_v37 }
  0x40   :  { %605 = vmatpush3.bf16.msra.mxu0 %v677_v38  ;;  %627 = vmatpush3.bf16.msra.mxu1 %v678_v39 }
  0xe3   :  { %v143_v51 = vpop.f32.mrf.mxu0  ;;  %v184_v52 = vpop.f32.mrf.mxu1 }
  0xe4   :  { %v144_v53 = vadd.f32 %v143_v51, %v59_v47  ;;  %v185_v54 = vadd.f32 %v184_v52, %v67_v48 }
  0xe5   :  { %v145_v55 = vpop.f32.mrf.mxu0  ;;  %v186_v56 = vpop.f32.mrf.mxu1 }
  0xe6   :  { %v193_v57 = vpack.c.bf16 %v185_v54, %v185_v54  ;;  %v146_v58 = vadd.f32 %v145_v55, %v63_v49  ;;  %v187_v59 = vadd.f32 %v186_v56, %v71_v50  ;;  %v191_v60 = vpack.c.bf16 %v144_v53, %v144_v53 }
  0xe7   :  { %v147_v61 = vpop.f32.mrf.mxu0  ;;  %v188_v62 = vpop.f32.mrf.mxu1 }
  0xe8   :  { %v192_v63 = vpack.c.bf16 %v146_v58, %v146_v58  ;;  %v194_v1 = vpack.c.bf16 %v187_v59, %v187_v59  ;;  %v197_v2 = vmax.bf16 %v729_v0, %v193_v57  ;;  %v195_v7 = vmax.bf16 %v729_v0, %v191_v60 }
  0xe9   :  { %v148_v3 = vpop.f32.mrf.mxu0  ;;  %v189_v4 = vpop.f32.mrf.mxu1 }
  0xea   :  { %v196_v5 = vmax.bf16 %v729_v0, %v192_v63  ;;  %v198_v6 = vmax.bf16 %v729_v0, %v194_v1 }
  0xec   :  { %494 = vmatprep.mubr.bf16.mxu0 %v196_v5  ;;  %534 = vmatprep.mubr.bf16.mxu1 %v198_v6 }
  0xed   :  { %495 = vmatmul.mubr.bf16.vlgmr.msra.gmra.mxu0 %v195_v7  ;;  %535 = vmatmul.mubr.bf16.vlgmr.msra.gmra.mxu1 %v197_v2 }
 0x1ad   :  { %v606_v8 = vpop.f32.mrf.mxu0  ;;  %v628_v9 = vpop.f32.mrf.mxu1 }
 0x1af   :  { %v607_v11 = vpop.f32.mrf.mxu0  ;;  %v629_v12 = vpop.f32.mrf.mxu1 }
 0x1b0   :  { %v608_v13 = vadd.f32 %v607_v11, %v606_v8  ;;  %v630_v17 = vadd.f32 %v629_v12, %v628_v9 }
 0x1b1   :  { %v609_v14 = vpop.f32.mrf.mxu0  ;;  %v631_v15 = vpop.f32.mrf.mxu1 }
 0x1b2   :  { %v497_v16 = vadd.f32 %v608_v13, %v557_v10 }
 0x1b3   :  { %v610_v18 = vpop.f32.mrf.mxu0  ;;  %v632_v19 = vpop.f32.mrf.mxu1 }
 0x1b4   :  { %v537_v0 = vadd.f32 %v630_v17, %v497_v16 }
 0x1b6   :  { %542 = vst [vmem:[%s791_s5] sm:$0xff] %v537_v0 }
 0x1b7   :  { %547 = vsyncpa [#allocation3], 1 }
 0x1b8   :  { %548 = vsyncpa [#allocation5], 1 }

</bundles_post_ra>
